<compile_context>
chip_gen: v6e
topology: v6e:2x2x1
jax: 0.10.0
libtpu: 0.0.40
codegen_flags: <defaults>
</compile_context>

<pallas_src>
import functools

import jax
import jax.numpy as jnp
from jax.experimental import pallas as pl
from jax.experimental.pallas import tpu as pltpu

LATENT_SIZE = 64
HIDDEN_SIZE = 256
IMAGE_SIZE = 36

_LANE = 128     # lane width: pad output features to a multiple of this
_SUBLANE = 8    # sublane width: pad batch tiles to a multiple of this


def _generator_kernel(x_ref, w1_ref, b1_ref, w2_ref, b2_ref, w3_ref, b3_ref, o_ref):
    """Fused MLP forward for one batch tile: relu(relu(x@W1+b1)@W2+b2)@W3+b3."""
    x = x_ref[...]                                 # bf16 (tile, L)
    cdt = x.dtype

    h1 = jnp.dot(x, w1_ref[...], preferred_element_type=jnp.float32) + b1_ref[...]
    h1 = jnp.maximum(h1, 0.0).astype(cdt)

    h2 = jnp.dot(h1, w2_ref[...], preferred_element_type=jnp.float32) + b2_ref[...]
    h2 = jnp.maximum(h2, 0.0).astype(cdt)

    out = jnp.dot(h2, w3_ref[...], preferred_element_type=jnp.float32) + b3_ref[...]
    o_ref[...] = out.astype(o_ref.dtype)           # lane-dense (tile, 128) store


def _round_up(n, m):
    return ((n + m - 1) // m) * m


@functools.partial(jax.jit, static_argnames=("batch_tile",))
def generator_forward(x, params, *, batch_tile=256):
    """x: (B, LATENT_SIZE) float32 -> (B, IMAGE_SIZE) float32."""
    w1, b1, w2, b2, w3, b3 = params
    B, L = x.shape
    assert L == LATENT_SIZE
    H = w1.shape[1]
    O = w3.shape[1]

    # ---- lane-dense output padding: 36 -> 128 (zero columns, sliced off later)
    O_pad = _round_up(max(O, _LANE), _LANE)
    w3p = jnp.zeros((H, O_pad), w3.dtype).at[:, :O].set(w3)
    b3p = jnp.zeros((1, O_pad), b3.dtype).at[:, :O].set(b3)

    # ---- batch tiling: big tiles for big B, single grid step for tiny B
    B_min = _round_up(B, _SUBLANE)
    if B_min <= batch_tile:
        tile = B_min
        B_pad = B_min
    else:
        tile = _round_up(batch_tile, _SUBLANE)
        B_pad = _round_up(B, tile)
    if B_pad != B:
        x = jnp.pad(x, ((0, B_pad - B), (0, 0)))

    # ---- bf16 inputs/weights for the MXU; f32 accumulation/biases/output
    cdt = jnp.bfloat16
    xb = x.astype(cdt)
    w1b, w2b, w3b = w1.astype(cdt), w2.astype(cdt), w3p.astype(cdt)
    b1f, b2f, b3f = b1.astype(jnp.float32), b2.astype(jnp.float32), b3p.astype(jnp.float32)

    grid = (B_pad // tile,)

    # Weights/biases are small: every grid step gets the full (untiled) block.
    full = lambda shape: pl.BlockSpec(shape, lambda i: (0, 0))

    out_padded = pl.pallas_call(
        _generator_kernel,
        out_shape=jax.ShapeDtypeStruct((B_pad, O_pad), jnp.float32),
        grid_spec=pltpu.PrefetchScalarGridSpec(
            num_scalar_prefetch=0,
            grid=grid,
            in_specs=[
                pl.BlockSpec((tile, L), lambda i: (i, 0)),  # x tile
                full((L, H)),       # W1
                full((1, H)),       # b1
                full((H, H)),       # W2
                full((1, H)),       # b2
                full((H, O_pad)),   # W3 (padded)
                full((1, O_pad)),   # b3 (padded)
            ],
            out_specs=pl.BlockSpec((tile, O_pad), lambda i: (i, 0)),
        ),
        compiler_params=pltpu.CompilerParams(
            dimension_semantics=("parallel",),  # shards batch grid across TCs on v7x
        ),
    )(xb, w1b, b1f, w2b, b2f, w3b, b3f)

    return out_padded[:B, :O]


def init_params(key):
    """Deterministic init matching nn.Linear's default (uniform +-1/sqrt(fan_in)).

    Weights are stored as (in_features, out_features) -- transposed vs. PyTorch.
    """
    def linear(key, fan_in, fan_out):
        kw, kb = jax.random.split(key)
        bound = 1.0 / jnp.sqrt(float(fan_in))
        w = jax.random.uniform(kw, (fan_in, fan_out), jnp.float32, -bound, bound)
        b = jax.random.uniform(kb, (1, fan_out), jnp.float32, -bound, bound)
        return w, b

    k1, k2, k3 = jax.random.split(key, 3)
    w1, b1 = linear(k1, LATENT_SIZE, HIDDEN_SIZE)
    w2, b2 = linear(k2, HIDDEN_SIZE, HIDDEN_SIZE)
    w3, b3 = linear(k3, HIDDEN_SIZE, IMAGE_SIZE)
    return (w1, b1, w2, b2, w3, b3)


def generator_reference(x, params):
    """Pure-JAX f32 reference for correctness check."""
    w1, b1, w2, b2, w3, b3 = params
    h1 = jnp.maximum(x @ w1 + b1, 0.0)
    h2 = jnp.maximum(h1 @ w2 + b2, 0.0)
    return h2 @ w3 + b3


if __name__ == "__main__":
    key = jax.random.PRNGKey(0)
    k_params, k_x = jax.random.split(key)

    params = init_params(k_params)

    # Small single-step case (as in the module's typical use) and a tiled case
    # that exercises the multi-step batch grid.
    for batch in (8, 512):
        kx = jax.random.fold_in(k_x, batch)
        x = jax.random.normal(kx, (batch, LATENT_SIZE), jnp.float32)

        out = jax.block_until_ready(generator_forward(x, params, batch_tile=256))
        ref = generator_reference(x, params)

        assert out.shape == (batch, IMAGE_SIZE), out.shape
        # bf16 MXU inputs with f32 accumulation -> small relative deviation vs f32 ref.
        assert jnp.allclose(out, ref, atol=5e-2, rtol=5e-2), "mismatch vs reference"

    print("KERNEL_OK")
</pallas_src>

<mosaic_0001>
module attributes {stable_mosaic.version = 11 : i64} {
  func.func @_generator_kernel(%arg0: i32, %arg1: memref<8x64xbf16, #tpu.memory_space<vmem>>, %arg2: memref<64x256xbf16, #tpu.memory_space<vmem>>, %arg3: memref<1x256xf32, #tpu.memory_space<vmem>>, %arg4: memref<256x256xbf16, #tpu.memory_space<vmem>>, %arg5: memref<1x256xf32, #tpu.memory_space<vmem>>, %arg6: memref<256x128xbf16, #tpu.memory_space<vmem>>, %arg7: memref<1x128xf32, #tpu.memory_space<vmem>>, %arg8: memref<8x128xf32, #tpu.memory_space<vmem>>) attributes {dimension_semantics = [#tpu.dimension_semantics<parallel>], iteration_bounds = array<i64: 1>, scalar_prefetch = 0 : i64, scratch_operands = 0 : i64, tpu.core_type = #tpu.core_type<tc>, window_params = [{transform_indices = @transform_0, window_bounds = array<i64: 8, 64>}, {pipeline_mode = #tpu.pipeline_mode<synchronous>, transform_indices = @transform_1, window_bounds = array<i64: 64, 256>}, {pipeline_mode = #tpu.pipeline_mode<synchronous>, transform_indices = @transform_2, window_bounds = array<i64: 1, 256>}, {pipeline_mode = #tpu.pipeline_mode<synchronous>, transform_indices = @transform_3, window_bounds = array<i64: 256, 256>}, {pipeline_mode = #tpu.pipeline_mode<synchronous>, transform_indices = @transform_4, window_bounds = array<i64: 1, 256>}, {pipeline_mode = #tpu.pipeline_mode<synchronous>, transform_indices = @transform_5, window_bounds = array<i64: 256, 128>}, {pipeline_mode = #tpu.pipeline_mode<synchronous>, transform_indices = @transform_6, window_bounds = array<i64: 1, 128>}, {transform_indices = @transform_7, window_bounds = array<i64: 8, 128>}]} {
    %c0 = arith.constant 0 : index
    %c0_0 = arith.constant 0 : index
    %0 = vector.load %arg1[%c0, %c0_0] : memref<8x64xbf16, #tpu.memory_space<vmem>>, vector<8x64xbf16>
    %c0_1 = arith.constant 0 : index
    %c0_2 = arith.constant 0 : index
    %1 = vector.load %arg2[%c0_1, %c0_2] : memref<64x256xbf16, #tpu.memory_space<vmem>>, vector<64x256xbf16>
    %cst = arith.constant dense<0.000000e+00> : vector<8x256xf32>
    %2 = tpu.matmul %0, %1, %cst {dimension_numbers = #tpu.dot_dimension_numbers<[1], [0], [0], [1], [0, 0, 1, 1], [], []>} : vector<8x64xbf16>, vector<64x256xbf16>, vector<8x256xf32> -> vector<8x256xf32>
    %c0_3 = arith.constant 0 : index
    %c0_4 = arith.constant 0 : index
    %3 = vector.load %arg3[%c0_3, %c0_4] : memref<1x256xf32, #tpu.memory_space<vmem>>, vector<1x256xf32>
    %4 = vector.broadcast %3 : vector<1x256xf32> to vector<8x256xf32>
    %5 = arith.addf %2, %4 : vector<8x256xf32>
    %cst_5 = arith.constant 0.000000e+00 : f32
    %6 = vector.broadcast %cst_5 : f32 to vector<8x256xf32>
    %7 = arith.maximumf %5, %6 : vector<8x256xf32>
    %8 = arith.truncf %7 : vector<8x256xf32> to vector<8x256xbf16>
    %c0_6 = arith.constant 0 : index
    %c0_7 = arith.constant 0 : index
    %9 = vector.load %arg4[%c0_6, %c0_7] : memref<256x256xbf16, #tpu.memory_space<vmem>>, vector<256x256xbf16>
    %cst_8 = arith.constant dense<0.000000e+00> : vector<8x256xf32>
    %10 = tpu.matmul %8, %9, %cst_8 {dimension_numbers = #tpu.dot_dimension_numbers<[1], [0], [0], [1], [0, 0, 1, 1], [], []>} : vector<8x256xbf16>, vector<256x256xbf16>, vector<8x256xf32> -> vector<8x256xf32>
    %c0_9 = arith.constant 0 : index
    %c0_10 = arith.constant 0 : index
    %11 = vector.load %arg5[%c0_9, %c0_10] : memref<1x256xf32, #tpu.memory_space<vmem>>, vector<1x256xf32>
    %12 = vector.broadcast %11 : vector<1x256xf32> to vector<8x256xf32>
    %13 = arith.addf %10, %12 : vector<8x256xf32>
    %cst_11 = arith.constant 0.000000e+00 : f32
    %14 = vector.broadcast %cst_11 : f32 to vector<8x256xf32>
    %15 = arith.maximumf %13, %14 : vector<8x256xf32>
    %16 = arith.truncf %15 : vector<8x256xf32> to vector<8x256xbf16>
    %c0_12 = arith.constant 0 : index
    %c0_13 = arith.constant 0 : index
    %17 = vector.load %arg6[%c0_12, %c0_13] : memref<256x128xbf16, #tpu.memory_space<vmem>>, vector<256x128xbf16>
    %cst_14 = arith.constant dense<0.000000e+00> : vector<8x128xf32>
    %18 = tpu.matmul %16, %17, %cst_14 {dimension_numbers = #tpu.dot_dimension_numbers<[1], [0], [0], [1], [0, 0, 1, 1], [], []>} : vector<8x256xbf16>, vector<256x128xbf16>, vector<8x128xf32> -> vector<8x128xf32>
    %c0_15 = arith.constant 0 : index
    %c0_16 = arith.constant 0 : index
    %19 = vector.load %arg7[%c0_15, %c0_16] : memref<1x128xf32, #tpu.memory_space<vmem>>, vector<1x128xf32>
    %20 = vector.broadcast %19 : vector<1x128xf32> to vector<8x128xf32>
    %21 = arith.addf %18, %20 : vector<8x128xf32>
    %c0_17 = arith.constant 0 : index
    %c0_18 = arith.constant 0 : index
    %22 = vector.load %arg8[%c0_17, %c0_18] : memref<8x128xf32, #tpu.memory_space<vmem>>, vector<8x128xf32>
    tpu.vector_store %arg8[%c0_17, %c0_18], %21 {strides = array<i32>} : memref<8x128xf32, #tpu.memory_space<vmem>>, vector<8x128xf32>,
    return
  }
  func.func @transform_0(%arg0: i32) -> (i32, i32) {
    %c0_i32 = arith.constant 0 : i32
    %c0_i32_0 = arith.constant 0 : i32
    return %arg0, %c0_i32 : i32, i32
  }
  func.func @transform_1(%arg0: i32) -> (i32, i32) {
    %c0_i32 = arith.constant 0 : i32
    %c0_i32_0 = arith.constant 0 : i32
    %c0_i32_1 = arith.constant 0 : i32
    return %c0_i32, %c0_i32_0 : i32, i32
  }
  func.func @transform_2(%arg0: i32) -> (i32, i32) {
    %c0_i32 = arith.constant 0 : i32
    %c0_i32_0 = arith.constant 0 : i32
    %c0_i32_1 = arith.constant 0 : i32
    return %c0_i32, %c0_i32_0 : i32, i32
  }
  func.func @transform_3(%arg0: i32) -> (i32, i32) {
    %c0_i32 = arith.constant 0 : i32
    %c0_i32_0 = arith.constant 0 : i32
    %c0_i32_1 = arith.constant 0 : i32
    return %c0_i32, %c0_i32_0 : i32, i32
  }
  func.func @transform_4(%arg0: i32) -> (i32, i32) {
    %c0_i32 = arith.constant 0 : i32
    %c0_i32_0 = arith.constant 0 : i32
    %c0_i32_1 = arith.constant 0 : i32
    return %c0_i32, %c0_i32_0 : i32, i32
  }
  func.func @transform_5(%arg0: i32) -> (i32, i32) {
    %c0_i32 = arith.constant 0 : i32
    %c0_i32_0 = arith.constant 0 : i32
    %c0_i32_1 = arith.constant 0 : i32
    return %c0_i32, %c0_i32_0 : i32, i32
  }
  func.func @transform_6(%arg0: i32) -> (i32, i32) {
    %c0_i32 = arith.constant 0 : i32
    %c0_i32_0 = arith.constant 0 : i32
    %c0_i32_1 = arith.constant 0 : i32
    return %c0_i32, %c0_i32_0 : i32, i32
  }
  func.func @transform_7(%arg0: i32) -> (i32, i32) {
    %c0_i32 = arith.constant 0 : i32
    %c0_i32_0 = arith.constant 0 : i32
    return %arg0, %c0_i32 : i32, i32
  }
}

</mosaic_0001>

<bundles_post_ra>
// kernel: generator_forward.1
= control target key start
LH: loop header
LB: loop body
LE: loop exit
PB: predicated region body
PF: predicated region fallthrough
CT: control target
= control target key end

     0   :  { %v757_v2 = vmov 0   ;;  %vm89_vm0 = vcmask 523264   ;;  %s982_s0 = inlined_call_operand.vmem [shape: bf16[8,64], index: 0, kind: input, shape index: {}]   ;;  %s983_s1 = inlined_call_operand.vmem [shape: bf16[64,256], index: 1, kind: input, shape index: {}]   ;;  %s984_s2 = inlined_call_operand.vmem [shape: f32[1,256], index: 2, kind: input, shape index: {}]   ;;  %s985_s3 = inlined_call_operand.vmem [shape: bf16[256,256], index: 3, kind: input, shape index: {}]   ;;  %s986_s4 = inlined_call_operand.vmem [shape: f32[1,256], index: 4, kind: input, shape index: {}]   ;;  %s987_s5 = inlined_call_operand.vmem [shape: bf16[256,128], index: 5, kind: input, shape index: {}]   ;;  %s988_s6 = inlined_call_operand.vmem [shape: f32[1,128], index: 6, kind: input, shape index: {}]   ;;  %s989_s7 = inlined_call_operand.hbm [shape: f32[8,128], index: 7, kind: output, shape index: {}]  }
   0x1   :  { %v659_v0 = vld [vmem:[%s983_s1 + $0x34] ss:$8 sps:$4 sm:$0xff]   ;;  %v661_v1 = vld [vmem:[%s983_s1 + $0x30] ss:$8 sps:$4 sm:$0xff]   ;;  %125 = vmatprep.mubr.bf16.mxu0 %v757_v2  ;;  %v662_v3 = vld [vmem:[%s983_s1 + $0x24] ss:$8 sps:$4 sm:$0xff]  }
   0x2   :  { %101 = vmatprep.subr.bf16.mxu0 %v659_v0  ;;  %v664_v4 = vld [vmem:[%s983_s1 + $0x20] ss:$8 sps:$4 sm:$0xff]   ;;  %v665_v5 = vld [vmem:[%s983_s1 + $0x14] ss:$8 sps:$4 sm:$0xff]   ;;  %v667_v6 = vld [vmem:[%s983_s1 + $0x10] ss:$8 sps:$4 sm:$0xff]  }
   0x3   :  { %102 = vmatpush1.bf16.msra.mxu0 %v661_v1  ;;  %v671_v7 = vld [vmem:[%s985_s3 + $0x74] ss:$8 sps:$4 sm:$0xff]   ;;  %v673_v8 = vld [vmem:[%s985_s3 + $0x70] ss:$8 sps:$4 sm:$0xff]   ;;  %v674_v9 = vld [vmem:[%s985_s3 + $0x64] ss:$8 sps:$4 sm:$0xff]  }
   0x4   :  { %103 = vmatprep.subr.bf16.mxu0 %v662_v3  ;;  %v668_v10 = vld [vmem:[%s983_s1 + $0x4] ss:$8 sps:$4 sm:$0xff]   ;;  %342 = vmatprep.subr.bf16.mxu1 %v671_v7  ;;  %v676_v11 = vld [vmem:[%s985_s3 + $0x60] ss:$8 sps:$4 sm:$0xff]   ;;  %v677_v12 = vld [vmem:[%s985_s3 + $0x54] ss:$8 sps:$4 sm:$0xff]  }
   0x5   :  { %343 = vmatpush1.bf16.msra.mxu1 %v673_v8  ;;  %v670_v13 = vld [vmem:[%s983_s1] ss:$8 sps:$4 sm:$0xff]   ;;  %v679_v14 = vld [vmem:[%s985_s3 + $0x50] ss:$8 sps:$4 sm:$0xff]   ;;  %v680_v15 = vld [vmem:[%s985_s3 + $0x44] ss:$8 sps:$4 sm:$0xff]  }
   0x6   :  { %344 = vmatprep.subr.bf16.mxu1 %v674_v9  ;;  %v28_v16 = vld [vmem:[%s982_s0] sm:$0xf]  ;;  %v683_v18 = vld [vmem:[%s985_s3 + $0x34] ss:$8 sps:$4 sm:$0xff]   ;;  %v685_v19 = vld [vmem:[%s985_s3 + $0x30] ss:$8 sps:$4 sm:$0xff]  }
   0x7   :  { %104 = vmatpush1.bf16.msra.mxu0 %v664_v4  ;;  %v682_v17 = vld [vmem:[%s985_s3 + $0x40] ss:$8 sps:$4 sm:$0xff]   ;;  %v686_v20 = vld [vmem:[%s985_s3 + $0x24] ss:$8 sps:$4 sm:$0xff]   ;;  %v689_v22 = vld [vmem:[%s985_s3 + $0x14] ss:$8 sps:$4 sm:$0xff]  }
   0x8   :  { %105 = vmatprep.subr.bf16.mxu0 %v665_v5  ;;  %v688_v21 = vld [vmem:[%s985_s3 + $0x20] ss:$8 sps:$4 sm:$0xff]   ;;  %v691_v23 = vld [vmem:[%s985_s3 + $0x10] ss:$8 sps:$4 sm:$0xff]   ;;  %v692_v24 = vld [vmem:[%s985_s3 + $0x4] ss:$8 sps:$4 sm:$0xff]  }
   0x9   :  { %345 = vmatpush1.bf16.msra.mxu1 %v676_v11  ;;  %v694_v25 = vld [vmem:[%s985_s3] ss:$8 sps:$4 sm:$0xff]   ;;  %v695_v26 = vld [vmem:[%s985_s3 + $0xf4] ss:$8 sps:$4 sm:$0xff]  }
   0xa   :  { %346 = vmatprep.subr.bf16.mxu1 %v677_v12 }
   0xb   :  { %106 = vmatpush1.bf16.msra.mxu0 %v667_v6 }
   0xc   :  { %107 = vmatprep.subr.bf16.mxu0 %v668_v10 }
   0xd   :  { %347 = vmatpush1.bf16.msra.mxu1 %v679_v14 }
   0xe   :  { %348 = vmatprep.subr.bf16.mxu1 %v680_v15 }
   0xf   :  { %108 = vmatpush1.bf16.msra.mxu0 %v670_v13 }
  0x11   :  { %349 = vmatpush1.bf16.msra.mxu1 %v682_v17 }
  0x12   :  { %585 = vmatmul.mubr.msk.bf16.vlgmr.msra.gmra.mxu0 %vm89_vm0, %v28_v16  ;;  %350 = vmatprep.subr.bf16.mxu1 %v683_v18 }
  0x15   :  { %351 = vmatpush1.bf16.msra.mxu1 %v685_v19 }
  0x16   :  { %352 = vmatprep.subr.bf16.mxu1 %v686_v20 }
  0x19   :  { %353 = vmatpush1.bf16.msra.mxu1 %v688_v21 }
  0x1a   :  { %354 = vmatprep.subr.bf16.mxu1 %v689_v22 }
  0x1d   :  { %355 = vmatpush1.bf16.msra.mxu1 %v691_v23 }
  0x1e   :  { %356 = vmatprep.subr.bf16.mxu1 %v692_v24 }
  0x1f   :  { %12 = vsyncpa [#allocation3], 0  ;;  %v697_v27 = vld [vmem:[%s985_s3 + $0xf0] ss:$8 sps:$4 sm:$0xff]   ;;  %v698_v28 = vld [vmem:[%s985_s3 + $0xe4] ss:$8 sps:$4 sm:$0xff]   ;;  %v39_v54 = vlaneseq }
  0x20   :  { %v700_v29 = vld [vmem:[%s985_s3 + $0xe0] ss:$8 sps:$4 sm:$0xff]   ;;  %v701_v30 = vld [vmem:[%s985_s3 + $0xd4] ss:$8 sps:$4 sm:$0xff]   ;;  %v703_v31 = vld [vmem:[%s985_s3 + $0xd0] ss:$8 sps:$4 sm:$0xff]  }
  0x21   :  { %357 = vmatpush1.bf16.msra.mxu1 %v694_v25  ;;  %v704_v32 = vld [vmem:[%s985_s3 + $0xc4] ss:$8 sps:$4 sm:$0xff]   ;;  %v706_v33 = vld [vmem:[%s985_s3 + $0xc0] ss:$8 sps:$4 sm:$0xff]   ;;  %v707_v34 = vld [vmem:[%s985_s3 + $0xb4] ss:$8 sps:$4 sm:$0xff]  }
  0x22   :  { %358 = vmatprep.subr.bf16.mxu1 %v695_v26  ;;  %v709_v35 = vld [vmem:[%s985_s3 + $0xb0] ss:$8 sps:$4 sm:$0xff]   ;;  %v710_v36 = vld [vmem:[%s985_s3 + $0xa4] ss:$8 sps:$4 sm:$0xff]   ;;  %v712_v37 = vld [vmem:[%s985_s3 + $0xa0] ss:$8 sps:$4 sm:$0xff]  }
  0x23   :  { %v713_v38 = vld [vmem:[%s985_s3 + $0x94] ss:$8 sps:$4 sm:$0xff]   ;;  %v715_v39 = vld [vmem:[%s985_s3 + $0x90] ss:$8 sps:$4 sm:$0xff]   ;;  %v716_v40 = vld [vmem:[%s985_s3 + $0x84] ss:$8 sps:$4 sm:$0xff]  }
  0x24   :  { %v718_v41 = vld [vmem:[%s985_s3 + $0x80] ss:$8 sps:$4 sm:$0xff]   ;;  %v719_v42 = vld [vmem:[%s987_s5 + $0x78] sm:$0xff]   ;;  %v721_v44 = vld [vmem:[%s987_s5 + $0x70] sm:$0xff]   ;;  %v40_v55 = vshrl.u32 %v39_v54, 7 }
  0x25   :  { %359 = vmatpush2.bf16.msra.mxu1 %v697_v27  ;;  %v720_v43 = vld [vmem:[%s987_s5 + $0x38] sm:$0xff]   ;;  %635 = vmatprep.subr.bf16.mxu0 %v719_v42  ;;  %v722_v45 = vld [vmem:[%s987_s5 + $0x30] sm:$0xff]   ;;  %v723_v46 = vld [vmem:[%s987_s5 + $0x68] sm:$0xff]  }
  0x26   :  { %360 = vmatprep.subr.bf16.mxu1 %v698_v28  ;;  %636 = vmatpush3.bf16.msra.mxu0 %v720_v43  ;;  %v724_v47 = vld [vmem:[%s987_s5 + $0x28] sm:$0xff]   ;;  %v725_v48 = vld [vmem:[%s987_s5 + $0x60] sm:$0xff]   ;;  %v727_v50 = vld [vmem:[%s987_s5 + $0x58] sm:$0xff]   ;;  %v41_v56 = vsub.s32 0, %v40_v55  ;;  %v45_v58 = vsub.s32 1, %v40_v55 }
  0x27   :  { %637 = vmatprep.subr.bf16.mxu0 %v721_v44  ;;  %v726_v49 = vld [vmem:[%s987_s5 + $0x20] sm:$0xff]   ;;  %v728_v51 = vld [vmem:[%s987_s5 + $0x18] sm:$0xff]   ;;  %v729_v52 = vld [vmem:[%s987_s5 + $0x50] sm:$0xff]  }
  0x28   :  { %v730_v53 = vld [vmem:[%s987_s5 + $0x10] sm:$0xff]   ;;  %v37_v57 = vld [vmem:[%s984_s2] sm:$0x3]  ;;  %v731_v7 = vld [vmem:[%s987_s5 + $0x48] sm:$0xff]  }
  0x29   :  { %361 = vmatpush2.bf16.msra.mxu1 %v700_v29  ;;  %v42_v59 = vrot.slane %v37_v57, %v41_v56  ;;  %v46_v60 = vrot.slane %v37_v57, %v45_v58  ;;  %v732_v8 = vld [vmem:[%s987_s5 + $0x8] sm:$0xff]   ;;  %v733_v9 = vld [vmem:[%s987_s5 + $0x40] sm:$0xff]  }
  0x2a   :  { %362 = vmatprep.subr.bf16.mxu1 %v701_v30  ;;  %638 = vmatpush3.bf16.msra.mxu0 %v722_v45  ;;  %v734_v10 = vld [vmem:[%s987_s5] sm:$0xff]  }
  0x2b   :  { %639 = vmatprep.subr.bf16.mxu0 %v723_v46  ;;  %v170_v11 = vld [vmem:[%s986_s4] sm:$0x3]  ;;  %s758_s4 = smov [#allocation2]  }
  0x2c   :  { %v175_v12 = vrot.slane %v170_v11, %v41_v56  ;;  %v179_v13 = vrot.slane %v170_v11, %v45_v58  ;;  %v618_v26 = vld [vmem:[%s988_s6] ss:$0 sm:$0xff]  ;;  %s569_s17 = sshll.u32 %s758_s4, 4  ;;  %s570_s17 = int_to_ptr.vmem [resolvable:$true] %s569_s17 }
  0x2d   :  { %363 = vmatpush2.bf16.msra.mxu1 %v703_v31  ;;  %s735_s18 = scalar_lea.vmem %s570_s17, 128  ;;  %p740_p1 = scmp.lt.s32.totalorder %s570_s17, %s570_s17 }
  0x2e   :  { %364 = vmatprep.subr.bf16.mxu1 %v704_v32  ;;  %640 = vmatpush3.bf16.msra.mxu0 %v724_v47  ;;  %p736_p0 = scmp.ne.s32.totalorder %s570_s17, %s735_s18  ;;  %p741_p2 = scmp.lt.s32.totalorder %s735_s18, %s735_s18 }
  0x2f   :  { %641 = vmatprep.subr.bf16.mxu0 %v725_v48 }
  0x30   :  { %p742_p3 = por %p741_p2, %p740_p1 }
  0x31   :  { %365 = vmatpush2.bf16.msra.mxu1 %v706_v33 }
  0x32   :  { %366 = vmatprep.subr.bf16.mxu1 %v707_v34  ;;  %642 = vmatpush3.bf16.msra.mxu0 %v726_v49  ;;  %p743_p4 = pnand %p742_p3, %p736_p0 }
  0x33   :  { %643 = vmatprep.subr.bf16.mxu0 %v727_v50 }
  0x35   :  { %367 = vmatpush2.bf16.msra.mxu1 %v709_v35 }
  0x36   :  { %368 = vmatprep.subr.bf16.mxu1 %v710_v36  ;;  %644 = vmatpush3.bf16.msra.mxu0 %v728_v51 }
  0x37   :  { %645 = vmatprep.subr.bf16.mxu0 %v729_v52 }
  0x39   :  { %369 = vmatpush2.bf16.msra.mxu1 %v712_v37 }
  0x3a   :  { %370 = vmatprep.subr.bf16.mxu1 %v713_v38  ;;  %646 = vmatpush3.bf16.msra.mxu0 %v730_v53 }
  0x3b   :  { %647 = vmatprep.subr.bf16.mxu0 %v731_v7 }
  0x3d   :  { %371 = vmatpush2.bf16.msra.mxu1 %v715_v39 }
  0x3e   :  { %372 = vmatprep.subr.bf16.mxu1 %v716_v40  ;;  %648 = vmatpush3.bf16.msra.mxu0 %v732_v8 }
  0x3f   :  { %649 = vmatprep.subr.bf16.mxu0 %v733_v9 }
  0x41   :  { %373 = vmatpush2.bf16.msra.mxu1 %v718_v41 }
  0x42   :  { %650 = vmatpush3.bf16.msra.mxu0 %v734_v10 }
  0xd2   :  { %v127_v61 = vpop.f32.mrf.mxu0 }
  0xd3   :  { %v128_v62 = vadd.f32 %v127_v61, %v42_v59 }
  0xd4   :  { %v129_v63 = vpop.f32.mrf.mxu0 }
  0xd5   :  { %v130_v0 = vadd.f32 %v129_v63, %v46_v60  ;;  %v134_v1 = vmax.f32 %v128_v62, 0.0 }
  0xd6   :  { %v131_v2 = vpop.f32.mrf.mxu0 }
  0xd7   :  { %v135_v3 = vmax.f32 %v130_v0, 0.0  ;;  %v136_v6 = vpack.c.bf16 %v134_v1, %v134_v1 }
  0xd8   :  { %v132_v4 = vpop.f32.mrf.mxu0 }
  0xd9   :  { %v137_v5 = vpack.c.bf16 %v135_v3, %v135_v3 }
  0xdb   :  { %374 = vmatprep.mubr.bf16.mxu1 %v137_v5 }
  0xdc   :  { %375 = vmatmul.mubr.bf16.vlgmr.msra.gmra.mxu1 %v136_v6 }
 0x19c   :  { %v376_v14 = vpop.f32.mrf.mxu1 }
 0x19d   :  { %v377_v15 = vadd.f32 %v376_v14, %v175_v12 }
 0x19e   :  { %v378_v16 = vpop.f32.mrf.mxu1 }
 0x19f   :  { %v379_v17 = vadd.f32 %v378_v16, %v179_v13  ;;  %v383_v18 = vmax.f32 %v377_v15, 0.0 }
 0x1a0   :  { %v380_v19 = vpop.f32.mrf.mxu1 }
 0x1a1   :  { %v384_v20 = vmax.f32 %v379_v17, 0.0  ;;  %v385_v23 = vpack.c.bf16 %v383_v18, %v383_v18 }
 0x1a2   :  { %v381_v21 = vpop.f32.mrf.mxu1 }
 0x1a3   :  { %v386_v22 = vpack.c.bf16 %v384_v20, %v384_v20 }
 0x1a5   :  { %554 = vmatprep.mubr.bf16.mxu0 %v386_v22 }
 0x1a6   :  { %555 = vmatmul.mubr.bf16.vlgmr.msra.gmra.mxu0 %v385_v23 }
 0x266   :  { %v651_v24 = vpop.f32.mrf.mxu0 }
 0x268   :  { %v652_v25 = vpop.f32.mrf.mxu0 }
 0x269   :  { %v653_v27 = vadd.f32 %v652_v25, %v651_v24 }
 0x26a   :  { %v654_v28 = vpop.f32.mrf.mxu0 }
 0x26b   :  { %v557_v29 = vadd.f32 %v653_v27, %v618_v26 }
 0x26c   :  { %v655_v30 = vpop.f32.mrf.mxu0 }
 0x26d   :  { %562 = vst [vmem:[#allocation2] sm:$0xff] %v557_v29 }
 0x26e   :  { %746 = shalt.err (!%p743_p4)
}
 0x26f   :  { %572 = dma.vmem_to_hbm [thread:$0]  %s570_s17, 128, %s989_s7, [#allocation3]  }
 0x270   :  { %755 = dma.done.wait [#allocation3], 128  }
 0x271   :  { %756 = vsyncadd [#allocation3], 4294967168 }
 0x272   :  { %576 = vsyncpa [#allocation3], 1 }

</bundles_post_ra>
